<compile_context>
chip_gen: v5e
topology: v5e:2x2
jax: 0.10.0
libtpu: 0.0.40
codegen_flags: <defaults>
</compile_context>

<pallas_src>
import functools

import jax
import jax.numpy as jnp
from jax import lax
from jax.experimental import pallas as pl
from jax.experimental.pallas import tpu as pltpu


# --------------------------------------------------------------------------- #
# Kernel
# --------------------------------------------------------------------------- #
def _fused_proj_xent_kernel(x_ref, wt_ref, tgt_ref, loss_ref,
                            logit_sc, m_sc, l_sc, t_sc,
                            *, ignore_index, v_valid):
    """grid = (row_blocks, vocab_blocks, d_chunks).

    x_ref:   (tn, td) bf16          row tile x hidden chunk
    wt_ref:  (td, tv) bf16          transposed weight tile [D, V] layout
    tgt_ref: (tn, 1)  int32         global target ids
    loss_ref:(tn, 1)  f32           per-row loss (0 for ignored rows)
    logit_sc:(tn, tv) f32           logits accumulator over d chunks
    m/l/t_sc:(tn, 1)  f32           online-LSE state + target-logit accumulator
    """
    k = pl.program_id(1)
    d = pl.program_id(2)
    nk = pl.num_programs(1)
    nd = pl.num_programs(2)
    tv = wt_ref.shape[1]

    @pl.when((k == 0) & (d == 0))
    def _():
        m_sc[...] = jnp.full(m_sc.shape, -jnp.inf, m_sc.dtype)
        l_sc[...] = jnp.zeros(l_sc.shape, l_sc.dtype)
        t_sc[...] = jnp.zeros(t_sc.shape, t_sc.dtype)

    # Natural [M,K] x [K,N] MXU matmul (weight was pre-transposed in the
    # wrapper -> no per-step XLU transpose of the weight tile), f32 accumulate.
    partial = jnp.dot(x_ref[...], wt_ref[...], preferred_element_type=jnp.float32)

    @pl.when(d == 0)
    def _():
        logit_sc[...] = partial

    @pl.when(d > 0)
    def _():
        logit_sc[...] = logit_sc[...] + partial

    # Once the full-D logits for this (row, vocab) tile are ready: online LSE.
    @pl.when(d == nd - 1)
    def _():
        s = logit_sc[...]                                      # (tn, tv) f32
        col = lax.broadcasted_iota(jnp.int32, s.shape, 1)      # local vocab ids
        # Mask padded vocab columns (pad+mask handling of non-round V).
        s = jnp.where((col + k * tv) < v_valid, s, -jnp.inf)

        tgt = tgt_ref[...]                                     # (tn, 1) int32
        # Shift the per-row scalar instead of adding k*tv to the whole iota.
        match = col == (tgt - k * tv)                          # (tn, tv) bool
        # Target logit (0 if the target is not in this vocab tile / ignored).
        t_sc[...] += jnp.sum(jnp.where(match, s, 0.0), axis=-1, keepdims=True)

        m_prev = m_sc[...]
        m_new = jnp.maximum(m_prev, jnp.max(s, axis=-1, keepdims=True))
        l_sc[...] = (l_sc[...] * jnp.exp(m_prev - m_new)
                     + jnp.sum(jnp.exp(s - m_new), axis=-1, keepdims=True))
        m_sc[...] = m_new

    @pl.when((d == nd - 1) & (k == nk - 1))
    def _():
        lse = m_sc[...] + jnp.log(l_sc[...])
        per_row = lse - t_sc[...]                              # -log softmax[target]
        ignored = tgt_ref[...] == ignore_index
        loss_ref[...] = jnp.where(ignored, 0.0, per_row).astype(loss_ref.dtype)


# --------------------------------------------------------------------------- #
# Tiling / VMEM heuristics
# --------------------------------------------------------------------------- #
def _round_up(x, m):
    return ((x + m - 1) // m) * m


def _vmem_capacity_bytes():
    try:
        info = pltpu.get_tpu_info()
        cap = getattr(info, "vmem_capacity_bytes", None)
        if cap:
            return int(cap)
    except Exception:
        pass
    return 64 << 20  # conservative fallback = v7x per-core VMEM


def _vmem_estimate(tn, tv, td, x_bytes=2, w_bytes=2):
    """Per-step VMEM footprint, *including* the (tn, tv) f32 logits scratch and
    its exp/where temporaries (~3x), which the roofline budget must cover."""
    return (2 * tn * td * x_bytes        # double-buffered x tile
            + 2 * td * tv * w_bytes      # double-buffered weight tile
            + 3 * tn * tv * 4            # f32 logits scratch + temporaries
            + 4 * tn * 4                 # m/l/t row scratch
            + 4 * tn * 4 * 2)            # target + output blocks (double-buffered)


def _select_tiles(N, D, V, *, tn, tv, td, vmem_budget):
    # --- vocab tile: 512 by default (multiple of 256 for the 2x256 MXU on
    #     v6e/v7x, fine for v5e's 4x128 MXU); tv does NOT affect weight HBM
    #     traffic, it only sizes the weight double-buffer and logits scratch.
    if tv is None:
        tv = 512 if V >= 512 else _round_up(V, 128)
    else:
        tv = max(128, _round_up(min(tv, _round_up(V, 128)), 128))

    # --- hidden (contraction) chunk: full D unless D is very large, in which
    #     case chunk it so roofline-sized tn still fits 64 MiB VMEM (v7x).
    if td is not None:
        if td >= D or D % td != 0 or td % 128 != 0:
            td = D
    else:
        td = D
        if D > 4096:
            for cand in (2048, 1024, 512):
                if D % cand == 0:
                    td = cand
                    break

    # --- row tile: primary roofline knob.  Needs tn >= ~620-720 on v6e/v7x to
    #     be MXU-bound; target 1024, balanced across ceil(N/1024) blocks.
    tn_req = 1024 if tn is None else max(16, tn)
    n_blocks = max(1, -(-N // tn_req))
    tn = _round_up(-(-N // n_blocks), 16)       # 16-multiple: bf16 packed tile
    # v7x megacore: keep >= 2 row blocks when N is large enough so the
    # 'parallel' axis splits across both TensorCores.
    if n_blocks < 2 and N >= 1024:
        tn = _round_up(-(-N // 2), 16)

    # Shrink tn (then tv as a last resort) until the VMEM budget is met.
    while tn > 256 and _vmem_estimate(tn, tv, td) > vmem_budget:
        tn -= 128
    while tv > 128 and _vmem_estimate(tn, tv, td) > vmem_budget:
        tv -= 128
    return tn, tv, td


# --------------------------------------------------------------------------- #
# Wrapper
# --------------------------------------------------------------------------- #
def sl_fused_proj_loss(x, proj_weight, target, *,
                       ignore_index=-100, reduction="mean",
                       tn=None, tv=None, td=None):
    """Fused linear projection + cross-entropy (forward only).

    tn: row tile (tokens)  -- primary roofline knob (defaults to ~1024).
    tv: vocab tile         -- defaults to 512.
    td: hidden chunk       -- defaults to full D (chunked only for D > 4096).
    """
    assert x.ndim == 2 and proj_weight.ndim == 2
    N, D = x.shape
    V, D2 = proj_weight.shape
    assert D == D2
    assert target.shape == (N,)

    # Guarantee bf16 MXU operands (f32 operands drop MXU throughput ~4x).
    if x.dtype != jnp.bfloat16:
        x = x.astype(jnp.bfloat16)
    if proj_weight.dtype != jnp.bfloat16:
        proj_weight = proj_weight.astype(jnp.bfloat16)

    vmem_cap = _vmem_capacity_bytes()
    tn, tv, td = _select_tiles(N, D, V, tn=tn, tv=tv, td=td,
                               vmem_budget=int(vmem_cap * 0.70))

    n_pad = _round_up(N, tn)
    v_pad = _round_up(V, tv)
    assert D % td == 0
    nd = D // td

    # --- pad + pre-transpose inputs (one-time, amortized over N/tn weight reads)
    x_p = x if n_pad == N else jnp.pad(x, ((0, n_pad - N), (0, 0)))
    w_t = jnp.transpose(proj_weight)                      # (D, V): natural MXU RHS
    if v_pad != V:
        w_t = jnp.pad(w_t, ((0, 0), (0, v_pad - V)))
    tgt_i32 = target.astype(jnp.int32)
    if n_pad != N:
        tgt_i32 = jnp.pad(tgt_i32, (0, n_pad - N), constant_values=ignore_index)
    tgt2d = tgt_i32.reshape(n_pad, 1)

    # --- VMEM limit: always set explicitly (v5e default scoped limit is only
    #     ~16 MiB; the old ">28 MiB" heuristic never raised it there).
    est = _vmem_estimate(tn, tv, td)
    vmem_limit = int(min(vmem_cap - (2 << 20), max(2 * est, 32 << 20)))

    kernel = functools.partial(_fused_proj_xent_kernel,
                               ignore_index=ignore_index, v_valid=V)

    cost = pl.CostEstimate(
        flops=2 * N * V * D,
        transcendentals=N * V,
        bytes_accessed=int(N * D * 2
                           + (n_pad // tn) * v_pad * D * 2   # weight streamed per row block
                           + N * 4 * 2),
    )

    grid = (n_pad // tn, v_pad // tv, nd)

    per_row = pl.pallas_call(
        kernel,
        out_shape=jax.ShapeDtypeStruct((n_pad, 1), jnp.float32),
        grid_spec=pltpu.PrefetchScalarGridSpec(
            num_scalar_prefetch=0,
            grid=grid,
            in_specs=[
                pl.BlockSpec((tn, td), lambda i, k, d: (i, d)),   # x rows (resident over k when nd==1)
                # TODO(synk): optionally pipeline_mode=pl.Buffered(3) here on
                # 128 MiB-VMEM parts once xprof confirms exposed weight DMA.
                pl.BlockSpec((td, tv), lambda i, k, d: (d, k)),   # W^T vocab tile
                pl.BlockSpec((tn, 1), lambda i, k, d: (i, 0)),    # targets per row
            ],
            out_specs=pl.BlockSpec((tn, 1), lambda i, k, d: (i, 0)),
            scratch_shapes=[
                pltpu.VMEM((tn, tv), jnp.float32),   # logits accumulator over d
                pltpu.VMEM((tn, 1), jnp.float32),    # running max
                pltpu.VMEM((tn, 1), jnp.float32),    # running sum-exp
                pltpu.VMEM((tn, 1), jnp.float32),    # target-logit accumulator
            ],
        ),
        compiler_params=pltpu.CompilerParams(
            dimension_semantics=("parallel", "arbitrary", "arbitrary"),
            vmem_limit_bytes=vmem_limit,
        ),
        cost_estimate=cost,
    )(x_p, w_t, tgt2d)

    per_row = per_row[:N, 0]                     # drop padded rows, (N,) f32
    if reduction == "none":
        return per_row
    if reduction == "sum":
        return jnp.sum(per_row)
    # "mean": mean over non-ignored tokens (cut_cross_entropy default).
    # Note: matches the reference (NaN) if every row is ignored.
    valid = (target != ignore_index).astype(jnp.float32)
    return jnp.sum(per_row) / jnp.sum(valid)


# --------------------------------------------------------------------------- #
# Pure-JAX reference
# --------------------------------------------------------------------------- #
def _reference_per_row(x, w, target, ignore_index=-100):
    logits = jnp.dot(x.astype(jnp.float32), w.astype(jnp.float32).T)
    lse = jax.nn.logsumexp(logits, axis=-1)
    safe_t = jnp.where(target == ignore_index, 0, target)
    tgt_logit = jnp.take_along_axis(logits, safe_t[:, None], axis=-1)[:, 0]
    return jnp.where(target == ignore_index, 0.0, lse - tgt_logit)


def _reference_loss(x, w, target, ignore_index=-100):
    per_row = _reference_per_row(x, w, target, ignore_index)
    valid = (target != ignore_index).astype(jnp.float32)
    return jnp.sum(per_row) / jnp.sum(valid)


if __name__ == "__main__":
    key = jax.random.PRNGKey(0)

    # --- Test 1: non-round N and V (exercises row/vocab pad + -inf masking),
    #             default tiles, single tile on every grid axis.
    N1, D1, V1 = 48, 128, 300
    k1, k2, k3, key = jax.random.split(key, 4)
    x1 = (0.1 * jax.random.normal(k1, (N1, D1), jnp.float32)).astype(jnp.bfloat16)
    w1 = (0.05 * jax.random.normal(k2, (V1, D1), jnp.float32)).astype(jnp.bfloat16)
    t1 = jax.random.randint(k3, (N1,), 0, V1, dtype=jnp.int32)
    t1 = t1.at[3].set(-100).at[17].set(-100)            # exercise ignore_index

    loss1 = jax.block_until_ready(
        sl_fused_proj_loss(x1, w1, t1, ignore_index=-100, reduction="mean"))
    ref1 = _reference_loss(x1, w1, t1, ignore_index=-100)
    assert jnp.isfinite(loss1), "non-finite loss (test 1)"
    assert jnp.allclose(loss1, ref1, rtol=5e-2, atol=5e-2), (loss1, ref1)

    # --- Test 2: multi-tile grid on all three axes (3 row blocks incl. padded
    #             rows, 4 vocab tiles incl. padded tail, 2 D-chunks) to
    #             exercise online-LSE + logits-accumulator paths.
    N2, D2, V2 = 90, 256, 400
    k1, k2, k3, key = jax.random.split(key, 4)
    x2 = (0.1 * jax.random.normal(k1, (N2, D2), jnp.float32)).astype(jnp.bfloat16)
    w2 = (0.05 * jax.random.normal(k2, (V2, D2), jnp.float32)).astype(jnp.bfloat16)
    t2 = jax.random.randint(k3, (N2,), 0, V2, dtype=jnp.int32)
    t2 = t2.at[0].set(-100).at[55].set(-100)

    rows2 = jax.block_until_ready(
        sl_fused_proj_loss(x2, w2, t2, reduction="none", tn=32, tv=128, td=128))
    ref_rows2 = _reference_per_row(x2, w2, t2)
    assert rows2.shape == (N2,)
    assert jnp.allclose(rows2, ref_rows2, rtol=5e-2, atol=5e-2), "per-row mismatch"

    mean2 = jax.block_until_ready(
        sl_fused_proj_loss(x2, w2, t2, reduction="mean", tn=32, tv=128, td=128))
    ref_mean2 = _reference_loss(x2, w2, t2)
    assert jnp.isfinite(mean2), "non-finite loss (test 2)"
    assert jnp.allclose(mean2, ref_mean2, rtol=5e-2, atol=5e-2), (mean2, ref_mean2)

    print("KERNEL_OK")
</pallas_src>

<mosaic_0001>
module attributes {stable_mosaic.version = 11 : i64} {
  func.func @_fused_proj_xent_kernel(%arg0: i32, %arg1: i32, %arg2: i32, %arg3: memref<48x128xbf16, #tpu.memory_space<vmem>>, %arg4: memref<128x384xbf16, #tpu.memory_space<vmem>>, %arg5: memref<48x1xi32, #tpu.memory_space<vmem>>, %arg6: memref<48x1xf32, #tpu.memory_space<vmem>>, %arg7: memref<48x384xf32, #tpu.memory_space<vmem>>, %arg8: memref<48x1xf32, #tpu.memory_space<vmem>>, %arg9: memref<48x1xf32, #tpu.memory_space<vmem>>, %arg10: memref<48x1xf32, #tpu.memory_space<vmem>>) attributes {dimension_semantics = [#tpu.dimension_semantics<parallel>, #tpu.dimension_semantics<arbitrary>, #tpu.dimension_semantics<arbitrary>], iteration_bounds = array<i64: 1, 1, 1>, scalar_prefetch = 0 : i64, scratch_operands = 4 : i64, tpu.core_type = #tpu.core_type<tc>, window_params = [{transform_indices = @transform_0, window_bounds = array<i64: 48, 128>}, {transform_indices = @transform_1, window_bounds = array<i64: 128, 384>}, {transform_indices = @transform_2, window_bounds = array<i64: 48, 1>}, {transform_indices = @transform_3, window_bounds = array<i64: 48, 1>}]} {
    %c0_i32 = arith.constant 0 : i32
    %0 = arith.cmpi eq, %arg1, %c0_i32 : i32
    %c0_i32_0 = arith.constant 0 : i32
    %1 = arith.cmpi eq, %arg2, %c0_i32_0 : i32
    %2 = arith.andi %0, %1 : i1
    %3 = arith.extui %2 : i1 to i32
    %c0_i32_1 = arith.constant 0 : i32
    %4 = arith.cmpi ne, %3, %c0_i32_1 : i32
    scf.if %4 {
      %cst_14 = arith.constant 0xFF800000 : f32
      %22 = vector.broadcast %cst_14 : f32 to vector<48x1xf32>
      %c0_15 = arith.constant 0 : index
      %c0_16 = arith.constant 0 : index
      %23 = vector.load %arg8[%c0_15, %c0_16] : memref<48x1xf32, #tpu.memory_space<vmem>>, vector<48x1xf32>
      tpu.vector_store %arg8[%c0_15, %c0_16], %22 {strides = array<i32>} : memref<48x1xf32, #tpu.memory_space<vmem>>, vector<48x1xf32>,
      %cst_17 = arith.constant 0.000000e+00 : f32
      %24 = vector.broadcast %cst_17 : f32 to vector<48x1xf32>
      %c0_18 = arith.constant 0 : index
      %c0_19 = arith.constant 0 : index
      %25 = vector.load %arg9[%c0_18, %c0_19] : memref<48x1xf32, #tpu.memory_space<vmem>>, vector<48x1xf32>
      tpu.vector_store %arg9[%c0_18, %c0_19], %24 {strides = array<i32>} : memref<48x1xf32, #tpu.memory_space<vmem>>, vector<48x1xf32>,
      %cst_20 = arith.constant 0.000000e+00 : f32
      %26 = vector.broadcast %cst_20 : f32 to vector<48x1xf32>
      %c0_21 = arith.constant 0 : index
      %c0_22 = arith.constant 0 : index
      %27 = vector.load %arg10[%c0_21, %c0_22] : memref<48x1xf32, #tpu.memory_space<vmem>>, vector<48x1xf32>
      tpu.vector_store %arg10[%c0_21, %c0_22], %26 {strides = array<i32>} : memref<48x1xf32, #tpu.memory_space<vmem>>, vector<48x1xf32>,
    } else {
    }
    %c0 = arith.constant 0 : index
    %c0_2 = arith.constant 0 : index
    %5 = vector.load %arg3[%c0, %c0_2] : memref<48x128xbf16, #tpu.memory_space<vmem>>, vector<48x128xbf16>
    %c0_3 = arith.constant 0 : index
    %c0_4 = arith.constant 0 : index
    %6 = vector.load %arg4[%c0_3, %c0_4] : memref<128x384xbf16, #tpu.memory_space<vmem>>, vector<128x384xbf16>
    %cst = arith.constant dense<0.000000e+00> : vector<48x384xf32>
    %7 = tpu.matmul %5, %6, %cst {dimension_numbers = #tpu.dot_dimension_numbers<[1], [0], [0], [1], [0, 0, 1, 1], [], []>} : vector<48x128xbf16>, vector<128x384xbf16>, vector<48x384xf32> -> vector<48x384xf32>
    %c0_i32_5 = arith.constant 0 : i32
    %8 = arith.cmpi eq, %arg2, %c0_i32_5 : i32
    %9 = arith.extui %8 : i1 to i32
    %c0_i32_6 = arith.constant 0 : i32
    %10 = arith.cmpi ne, %9, %c0_i32_6 : i32
    scf.if %10 {
      %c0_14 = arith.constant 0 : index
      %c0_15 = arith.constant 0 : index
      %22 = vector.load %arg7[%c0_14, %c0_15] : memref<48x384xf32, #tpu.memory_space<vmem>>, vector<48x384xf32>
      tpu.vector_store %arg7[%c0_14, %c0_15], %7 {strides = array<i32>} : memref<48x384xf32, #tpu.memory_space<vmem>>, vector<48x384xf32>,
    } else {
    }
    %c0_i32_7 = arith.constant 0 : i32
    %11 = arith.cmpi sgt, %arg2, %c0_i32_7 : i32
    %12 = arith.extui %11 : i1 to i32
    %c0_i32_8 = arith.constant 0 : i32
    %13 = arith.cmpi ne, %12, %c0_i32_8 : i32
    scf.if %13 {
      %c0_14 = arith.constant 0 : index
      %c0_15 = arith.constant 0 : index
      %22 = vector.load %arg7[%c0_14, %c0_15] : memref<48x384xf32, #tpu.memory_space<vmem>>, vector<48x384xf32>
      %23 = arith.addf %22, %7 : vector<48x384xf32>
      %c0_16 = arith.constant 0 : index
      %c0_17 = arith.constant 0 : index
      %24 = vector.load %arg7[%c0_16, %c0_17] : memref<48x384xf32, #tpu.memory_space<vmem>>, vector<48x384xf32>
      tpu.vector_store %arg7[%c0_16, %c0_17], %23 {strides = array<i32>} : memref<48x384xf32, #tpu.memory_space<vmem>>, vector<48x384xf32>,
    } else {
    }
    %c0_i32_9 = arith.constant 0 : i32
    %14 = arith.cmpi eq, %arg2, %c0_i32_9 : i32
    %15 = arith.extui %14 : i1 to i32
    %c0_i32_10 = arith.constant 0 : i32
    %16 = arith.cmpi ne, %15, %c0_i32_10 : i32
    scf.if %16 {
      %c0_14 = arith.constant 0 : index
      %c0_15 = arith.constant 0 : index
      %22 = vector.load %arg7[%c0_14, %c0_15] : memref<48x384xf32, #tpu.memory_space<vmem>>, vector<48x384xf32>
      %23 = tpu.iota {dimensions = array<i32: 1>} : vector<48x384xi32>
      %c384_i32 = arith.constant 384 : i32
      %24 = arith.muli %arg1, %c384_i32 : i32
      %25 = vector.broadcast %24 : i32 to vector<48x384xi32>
      %26 = arith.addi %23, %25 : vector<48x384xi32>
      %c300_i32 = arith.constant 300 : i32
      %27 = vector.broadcast %c300_i32 : i32 to vector<48x384xi32>
      %28 = arith.cmpi slt, %26, %27 : vector<48x384xi32>
      %cst_16 = arith.constant 0xFF800000 : f32
      %29 = vector.broadcast %cst_16 : f32 to vector<48x384xf32>
      %30 = arith.select %28, %22, %29 : vector<48x384xi1>, vector<48x384xf32>
      %c0_17 = arith.constant 0 : index
      %c0_18 = arith.constant 0 : index
      %31 = vector.load %arg5[%c0_17, %c0_18] : memref<48x1xi32, #tpu.memory_space<vmem>>, vector<48x1xi32>
      %c384_i32_19 = arith.constant 384 : i32
      %32 = arith.muli %arg1, %c384_i32_19 : i32
      %33 = vector.broadcast %32 : i32 to vector<48x1xi32>
      %34 = arith.subi %31, %33 : vector<48x1xi32>
      %35 = vector.broadcast %34 : vector<48x1xi32> to vector<48x384xi32>
      %36 = arith.cmpi eq, %23, %35 : vector<48x384xi32>
      %c0_20 = arith.constant 0 : index
      %c0_21 = arith.constant 0 : index
      %37 = vector.load %arg10[%c0_20, %c0_21] : memref<48x1xf32, #tpu.memory_space<vmem>>, vector<48x1xf32>
      %cst_22 = arith.constant 0.000000e+00 : f32
      %38 = vector.broadcast %cst_22 : f32 to vector<48x384xf32>
      %39 = arith.select %36, %30, %38 : vector<48x384xi1>, vector<48x384xf32>
      %cst_23 = arith.constant dense<0.000000e+00> : vector<48xf32>
      %40 = vector.multi_reduction <add>, %39, %cst_23 [1] : vector<48x384xf32> to vector<48xf32>
      %41 = vector.shape_cast %40 : vector<48xf32> to vector<48x1xf32>
      %42 = arith.addf %37, %41 : vector<48x1xf32>
      %c0_24 = arith.constant 0 : index
      %c0_25 = arith.constant 0 : index
      %43 = vector.load %arg10[%c0_24, %c0_25] : memref<48x1xf32, #tpu.memory_space<vmem>>, vector<48x1xf32>
      tpu.vector_store %arg10[%c0_24, %c0_25], %42 {strides = array<i32>} : memref<48x1xf32, #tpu.memory_space<vmem>>, vector<48x1xf32>,
      %c0_26 = arith.constant 0 : index
      %c0_27 = arith.constant 0 : index
      %44 = vector.load %arg8[%c0_26, %c0_27] : memref<48x1xf32, #tpu.memory_space<vmem>>, vector<48x1xf32>
      %cst_28 = arith.constant dense<0xFF800000> : vector<48xf32>
      %45 = vector.multi_reduction <maximumf>, %30, %cst_28 [1] : vector<48x384xf32> to vector<48xf32>
      %46 = vector.shape_cast %45 : vector<48xf32> to vector<48x1xf32>
      %47 = arith.maximumf %44, %46 : vector<48x1xf32>
      %c0_29 = arith.constant 0 : index
      %c0_30 = arith.constant 0 : index
      %48 = vector.load %arg9[%c0_29, %c0_30] : memref<48x1xf32, #tpu.memory_space<vmem>>, vector<48x1xf32>
      %49 = arith.subf %44, %47 : vector<48x1xf32>
      %50 = math.exp %49 : vector<48x1xf32>
      %51 = arith.mulf %48, %50 : vector<48x1xf32>
      %52 = vector.broadcast %47 : vector<48x1xf32> to vector<48x384xf32>
      %53 = arith.subf %30, %52 : vector<48x384xf32>
      %54 = math.exp %53 : vector<48x384xf32>
      %cst_31 = arith.constant dense<0.000000e+00> : vector<48xf32>
      %55 = vector.multi_reduction <add>, %54, %cst_31 [1] : vector<48x384xf32> to vector<48xf32>
      %56 = vector.shape_cast %55 : vector<48xf32> to vector<48x1xf32>
      %57 = arith.addf %51, %56 : vector<48x1xf32>
      %c0_32 = arith.constant 0 : index
      %c0_33 = arith.constant 0 : index
      %58 = vector.load %arg9[%c0_32, %c0_33] : memref<48x1xf32, #tpu.memory_space<vmem>>, vector<48x1xf32>
      tpu.vector_store %arg9[%c0_32, %c0_33], %57 {strides = array<i32>} : memref<48x1xf32, #tpu.memory_space<vmem>>, vector<48x1xf32>,
      %c0_34 = arith.constant 0 : index
      %c0_35 = arith.constant 0 : index
      %59 = vector.load %arg8[%c0_34, %c0_35] : memref<48x1xf32, #tpu.memory_space<vmem>>, vector<48x1xf32>
      tpu.vector_store %arg8[%c0_34, %c0_35], %47 {strides = array<i32>} : memref<48x1xf32, #tpu.memory_space<vmem>>, vector<48x1xf32>,
    } else {
    }
    %c0_i32_11 = arith.constant 0 : i32
    %17 = arith.cmpi eq, %arg2, %c0_i32_11 : i32
    %c0_i32_12 = arith.constant 0 : i32
    %18 = arith.cmpi eq, %arg1, %c0_i32_12 : i32
    %19 = arith.andi %17, %18 : i1
    %20 = arith.extui %19 : i1 to i32
    %c0_i32_13 = arith.constant 0 : i32
    %21 = arith.cmpi ne, %20, %c0_i32_13 : i32
    scf.if %21 {
      %c0_14 = arith.constant 0 : index
      %c0_15 = arith.constant 0 : index
      %22 = vector.load %arg8[%c0_14, %c0_15] : memref<48x1xf32, #tpu.memory_space<vmem>>, vector<48x1xf32>
      %c0_16 = arith.constant 0 : index
      %c0_17 = arith.constant 0 : index
      %23 = vector.load %arg9[%c0_16, %c0_17] : memref<48x1xf32, #tpu.memory_space<vmem>>, vector<48x1xf32>
      %24 = math.log %23 : vector<48x1xf32>
      %25 = arith.addf %22, %24 : vector<48x1xf32>
      %c0_18 = arith.constant 0 : index
      %c0_19 = arith.constant 0 : index
      %26 = vector.load %arg10[%c0_18, %c0_19] : memref<48x1xf32, #tpu.memory_space<vmem>>, vector<48x1xf32>
      %27 = arith.subf %25, %26 : vector<48x1xf32>
      %c0_20 = arith.constant 0 : index
      %c0_21 = arith.constant 0 : index
      %28 = vector.load %arg5[%c0_20, %c0_21] : memref<48x1xi32, #tpu.memory_space<vmem>>, vector<48x1xi32>
      %c-100_i32 = arith.constant -100 : i32
      %29 = vector.broadcast %c-100_i32 : i32 to vector<48x1xi32>
      %30 = arith.cmpi eq, %28, %29 : vector<48x1xi32>
      %cst_22 = arith.constant 0.000000e+00 : f32
      %31 = vector.broadcast %cst_22 : f32 to vector<48x1xf32>
      %32 = arith.select %30, %31, %27 : vector<48x1xi1>, vector<48x1xf32>
      %c0_23 = arith.constant 0 : index
      %c0_24 = arith.constant 0 : index
      %33 = vector.load %arg6[%c0_23, %c0_24] : memref<48x1xf32, #tpu.memory_space<vmem>>, vector<48x1xf32>
      tpu.vector_store %arg6[%c0_23, %c0_24], %32 {strides = array<i32>} : memref<48x1xf32, #tpu.memory_space<vmem>>, vector<48x1xf32>,
    } else {
    }
    return
  }
  func.func @transform_0(%arg0: i32, %arg1: i32, %arg2: i32) -> (i32, i32) {
    %c0_i32 = arith.constant 0 : i32
    return %arg0, %arg2 : i32, i32
  }
  func.func @transform_1(%arg0: i32, %arg1: i32, %arg2: i32) -> (i32, i32) {
    %c0_i32 = arith.constant 0 : i32
    return %arg2, %arg1 : i32, i32
  }
  func.func @transform_2(%arg0: i32, %arg1: i32, %arg2: i32) -> (i32, i32) {
    %c0_i32 = arith.constant 0 : i32
    %c0_i32_0 = arith.constant 0 : i32
    return %arg0, %c0_i32 : i32, i32
  }
  func.func @transform_3(%arg0: i32, %arg1: i32, %arg2: i32) -> (i32, i32) {
    %c0_i32 = arith.constant 0 : i32
    %c0_i32_0 = arith.constant 0 : i32
    return %arg0, %c0_i32 : i32, i32
  }
}

</mosaic_0001>

<bundles_post_ra>
// kernel: tpu_custom_call.1
= control target key start
LH: loop header
LB: loop body
LE: loop exit
PB: predicated region body
PF: predicated region fallthrough
CT: control target
= control target key end

     0   :  { %8 = vsyncpa [#allocation7], 0  ;;  %s1054_s15 = smov [#allocation6]   ;;  %s1055_s17 = smov 192   ;;  %s1405_s0 = inlined_call_operand.vmem [shape: bf16[48,128], index: 0, kind: input, shape index: {}]   ;;  %s1406_s1 = inlined_call_operand.hbm [shape: bf16[128,384], index: 1, kind: input, shape index: {}]   ;;  %s1407_s2 = inlined_call_operand.vmem [shape: s32[48,1], index: 2, kind: input, shape index: {}]   ;;  %s1408_s3 = inlined_call_operand.vmem [shape: f32[48,1], index: 3, kind: output, shape index: {}]  }
   0x1   :  { %s15_s14 = sshll.u32 %s1406_s1, 4  ;;  %s17_s16 = sshll.u32 %s1054_s15, 4  ;;  %s16_s14 = int_to_ptr.hbm [resolvable:$true] %s15_s14  ;;  %s18_s16 = int_to_ptr.vmem [resolvable:$true] %s17_s16 }
   0x2   :  { %s1056_s18 = smov 12  }
   0x3   :  { %23 = dma.hbm_to_vmem [thread:$0]  %s16_s14, 3072, %s18_s16, [#allocation7], %s1055_s17, %s1055_s17, %s1056_s18  }
   0x4   :  { %1052 = dma.done.wait [#allocation7], 3072  }
   0x5   :  { %1053 = vsyncadd [#allocation7], 4294964224  ;;  %v914_v0 = vld [vmem:[#allocation6 + $0xa8] sm:$0xf]  ;;  %v949_v1 = vld [vmem:[#allocation6 + $0xb0] sm:$0xf0] }
   0x6   :  { %v948_v2 = vld [vmem:[#allocation6 + $0xac] sm:$0xf]  ;;  %v915_v3 = vor.u32 %v949_v1, %v914_v0  ;;  %v916_v4 = vld [vmem:[#allocation6 + $0xb4] sm:$0xf0]  ;;  %v922_v5 = vld [vmem:[#allocation6 + $0xb0] sm:$0xf] }
   0x7   :  { %v950_v6 = vld [vmem:[#allocation6 + $0xb8] sm:$0xf0]  ;;  %v919_v7 = vor.u32 %v948_v2, %v916_v4  ;;  %v902_v9 = vld [vmem:[#allocation6 + $0x90] sm:$0xf]  ;;  %v945_v11 = vld [vmem:[#allocation6 + $0x94] sm:$0xf] }
   0x8   :  { %v923_v8 = vor.u32 %v950_v6, %v922_v5  ;;  %v946_v10 = vld [vmem:[#allocation6 + $0x98] sm:$0xf0]  ;;  %239 = vmatpush.bf16.msra.mxu0 %v915_v3  ;;  %v904_v13 = vld [vmem:[#allocation6 + $0x9c] sm:$0xf0]  ;;  %v910_v14 = vld [vmem:[#allocation6 + $0x98] sm:$0xf]  ;;  %951 = vmatpush.bf16.msra.mxu3 %v915_v3 }
   0x9   :  { %v903_v12 = vor.u32 %v946_v10, %v902_v9  ;;  %v947_v15 = vld [vmem:[#allocation6 + $0xa0] sm:$0xf0]  ;;  %263 = vmatpush.bf16.msra.mxu1 %v919_v7  ;;  %v907_v16 = vor.u32 %v945_v11, %v904_v13  ;;  %v890_v18 = vld [vmem:[#allocation6 + $0x78] sm:$0xf]  ;;  %v942_v20 = vld [vmem:[#allocation6 + $0x7c] sm:$0xf] }
   0xa   :  { %287 = vmatpush.bf16.msra.mxu2 %v923_v8  ;;  %v911_v17 = vor.u32 %v947_v15, %v910_v14  ;;  %v943_v19 = vld [vmem:[#allocation6 + $0x80] sm:$0xf0]  ;;  %v892_v21 = vld [vmem:[#allocation6 + $0x84] sm:$0xf0]  ;;  %v898_v22 = vld [vmem:[#allocation6 + $0x80] sm:$0xf]  ;;  %v411_v14 = vlaneseq }
   0xb   :  { %v944_v23 = vld [vmem:[#allocation6 + $0x88] sm:$0xf0]  ;;  %v891_v24 = vor.u32 %v943_v19, %v890_v18  ;;  %v895_v25 = vor.u32 %v942_v20, %v892_v21  ;;  %v878_v27 = vld [vmem:[#allocation6 + $0x60] sm:$0xf]  ;;  %v939_v29 = vld [vmem:[#allocation6 + $0x64] sm:$0xf] }
   0xc   :  { %240 = vmatpush.bf16.msra.mxu0 %v903_v12  ;;  %952 = vmatpush.bf16.msra.mxu3 %v903_v12  ;;  %v899_v26 = vor.u32 %v944_v23, %v898_v22  ;;  %v940_v28 = vld [vmem:[#allocation6 + $0x68] sm:$0xf0]  ;;  %v880_v30 = vld [vmem:[#allocation6 + $0x6c] sm:$0xf0]  ;;  %v886_v31 = vld [vmem:[#allocation6 + $0x68] sm:$0xf] }
   0xd   :  { %264 = vmatpush.bf16.msra.mxu1 %v907_v16  ;;  %v941_v32 = vld [vmem:[#allocation6 + $0x70] sm:$0xf0]  ;;  %v879_v33 = vor.u32 %v940_v28, %v878_v27  ;;  %v883_v34 = vor.u32 %v939_v29, %v880_v30  ;;  %v866_v36 = vld [vmem:[#allocation6 + $0x48] sm:$0xf]  ;;  %v936_v38 = vld [vmem:[#allocation6 + $0x4c] sm:$0xf] }
   0xe   :  { %288 = vmatpush.bf16.msra.mxu2 %v911_v17  ;;  %v887_v35 = vor.u32 %v941_v32, %v886_v31  ;;  %v937_v37 = vld [vmem:[#allocation6 + $0x50] sm:$0xf0]  ;;  %v868_v39 = vld [vmem:[#allocation6 + $0x54] sm:$0xf0]  ;;  %v874_v40 = vld [vmem:[#allocation6 + $0x50] sm:$0xf] }
   0xf   :  { %v938_v41 = vld [vmem:[#allocation6 + $0x58] sm:$0xf0]  ;;  %v867_v42 = vor.u32 %v937_v37, %v866_v36  ;;  %v854_v43 = vld [vmem:[#allocation6 + $0x30] sm:$0xf]  ;;  %v871_v44 = vor.u32 %v936_v38, %v868_v39  ;;  %v933_v47 = vld [vmem:[#allocation6 + $0x34] sm:$0xf] }
  0x10   :  { %241 = vmatpush.bf16.msra.mxu0 %v891_v24  ;;  %953 = vmatpush.bf16.msra.mxu3 %v891_v24  ;;  %v875_v45 = vor.u32 %v938_v41, %v874_v40  ;;  %v934_v46 = vld [vmem:[#allocation6 + $0x38] sm:$0xf0]  ;;  %v1086_v48 = vld [vmem:[%s1407_s2] sm:$0xff]  ;;  %v856_v49 = vld [vmem:[#allocation6 + $0x3c] sm:$0xf0]  ;;  %v1057_v52 = vmov 0  }
  0x11   :  { %265 = vmatpush.bf16.msra.mxu1 %v895_v25  ;;  %v862_v50 = vld [vmem:[#allocation6 + $0x38] sm:$0xf]  ;;  %v935_v51 = vld [vmem:[#allocation6 + $0x40] sm:$0xf0]  ;;  %965 = vset.pattern.permute.xlu0 %v1057_v52  ;;  %v855_v53 = vor.u32 %v934_v46, %v854_v43  ;;  %v859_v55 = vor.u32 %v933_v47, %v856_v49  ;;  %v930_v59 = vld [vmem:[#allocation6 + $0x1c] sm:$0xf] }
  0x12   :  { %289 = vmatpush.bf16.msra.mxu2 %v899_v26  ;;  %966 = vset.pattern.permute.xlu1 %v1057_v52  ;;  %v1092_v54 = vld [vmem:[%s1407_s2 + $0x8] sm:$0xff]  ;;  %v863_v56 = vor.u32 %v935_v51, %v862_v50  ;;  %v931_v58 = vld [vmem:[#allocation6 + $0x20] sm:$0xf0]  ;;  %v844_v60 = vld [vmem:[#allocation6 + $0x24] sm:$0xf0]  ;;  %v1104_v15 = vand.u32 127, %v411_v14 }
  0x13   :  { %454 = vperm.xlu0 %965, %v1086_v48   ;;  %967 = vset.pattern.permute.xlu2 %v1057_v52  ;;  %v842_v57 = vld [vmem:[#allocation6 + $0x18] sm:$0xf]  ;;  %v850_v61 = vld [vmem:[#allocation6 + $0x20] sm:$0xf]  ;;  %v932_v62 = vld [vmem:[#allocation6 + $0x28] sm:$0xf0]  ;;  %v847_v0 = vor.u32 %v930_v59, %v844_v60 }
  0x14   :  { %242 = vmatpush.bf16.msra.mxu0 %v879_v33  ;;  %954 = vmatpush.bf16.msra.mxu3 %v879_v33  ;;  %v843_v63 = vor.u32 %v931_v58, %v842_v57  ;;  %v851_v1 = vor.u32 %v932_v62, %v850_v61  ;;  %v830_v2 = vld [vmem:[#allocation6] sm:$0xf]  ;;  %v928_v3 = vld [vmem:[#allocation6 + $0x8] sm:$0xf0]  ;;  %v927_v4 = vld [vmem:[#allocation6 + $0x4] sm:$0xf] }
  0x15   :  { %266 = vmatpush.bf16.msra.mxu1 %v883_v34  ;;  %457 = vperm.xlu1 %966, %v1092_v54   ;;  %v832_v5 = vld [vmem:[#allocation6 + $0xc] sm:$0xf0]  ;;  %v838_v6 = vld [vmem:[#allocation6 + $0x8] sm:$0xf]  ;;  %v929_v7 = vld [vmem:[#allocation6 + $0x10] sm:$0xf0]  ;;  %v831_v8 = vor.u32 %v928_v3, %v830_v2 }
  0x16   :  { %290 = vmatpush.bf16.msra.mxu2 %v887_v35  ;;  %v835_v9 = vor.u32 %v927_v4, %v832_v5  ;;  %v839_v10 = vor.u32 %v929_v7, %v838_v6  ;;  %v924_v11 = vld [vmem:[%s1405_s0] sm:$0xff]  ;;  %v925_v12 = vld [vmem:[%s1405_s0 + $0x8] sm:$0xff]  ;;  %v926_v13 = vld [vmem:[%s1405_s0 + $0x10] sm:$0xff]  ;;  %v1109_v17 = vadd.s32 256, %v1104_v15  ;;  %vm36_vm1 = vcmask 7168  }
  0x17   :  { %v1058_v31 = vmov -inf  }
  0x18   :  { %243 = vmatpush.bf16.msra.mxu0 %v867_v42  ;;  %955 = vmatpush.bf16.msra.mxu3 %v867_v42  ;;  %vm422_vm0 = vcmp.lt.s32.totalorder %v1109_v17, 300  ;;  %37 = vst.msk [vmem:[#allocation3] sm:$0xff] %vm36_vm1, %v1058_v31 }
  0x19   :  { %267 = vmatpush.bf16.msra.mxu1 %v871_v44  ;;  %38 = vst.msk [vmem:[#allocation3 + $0x8] sm:$0xff] %vm36_vm1, %v1058_v31 }
  0x1a   :  { %291 = vmatpush.bf16.msra.mxu2 %v875_v45  ;;  %39 = vst.msk [vmem:[#allocation3 + $0x10] sm:$0xff] %vm36_vm1, %v1058_v31 }
  0x1b   :  { %40 = vst.msk [vmem:[#allocation3 + $0x18] sm:$0xff] %vm36_vm1, %v1058_v31 }
  0x1c   :  { %244 = vmatpush.bf16.msra.mxu0 %v855_v53  ;;  %956 = vmatpush.bf16.msra.mxu3 %v855_v53  ;;  %41 = vst.msk [vmem:[#allocation3 + $0x20] sm:$0xff] %vm36_vm1, %v1058_v31 }
  0x1d   :  { %268 = vmatpush.bf16.msra.mxu1 %v859_v55  ;;  %42 = vst.msk [vmem:[#allocation3 + $0x28] sm:$0xff] %vm36_vm1, %v1058_v31 }
  0x1e   :  { %292 = vmatpush.bf16.msra.mxu2 %v863_v56  ;;  %v1059_v56 = vmov 0.0  }
  0x1f   :  { %43 = vst.msk [vmem:[#allocation4] sm:$0xff] %vm36_vm1, %v1059_v56  ;;  %v1196_v58 = vld [vmem:[#allocation3] sm:$0xff] }
  0x20   :  { %245 = vmatpush.bf16.msra.mxu0 %v843_v63  ;;  %957 = vmatpush.bf16.msra.mxu3 %v843_v63  ;;  %44 = vst.msk [vmem:[#allocation4 + $0x8] sm:$0xff] %vm36_vm1, %v1059_v56  ;;  %v1206_v62 = vld [vmem:[#allocation3 + $0x8] sm:$0xff] }
  0x21   :  { %269 = vmatpush.bf16.msra.mxu1 %v847_v0  ;;  %45 = vst.msk [vmem:[#allocation4 + $0x10] sm:$0xff] %vm36_vm1, %v1059_v56  ;;  %v1218_v3 = vld [vmem:[#allocation3 + $0x10] sm:$0xff] }
  0x22   :  { %293 = vmatpush.bf16.msra.mxu2 %v851_v1  ;;  %46 = vst.msk [vmem:[#allocation4 + $0x18] sm:$0xff] %vm36_vm1, %v1059_v56  ;;  %v1228_v7 = vld [vmem:[#allocation3 + $0x18] sm:$0xff] }
  0x23   :  { %47 = vst.msk [vmem:[#allocation4 + $0x20] sm:$0xff] %vm36_vm1, %v1059_v56 }
  0x24   :  { %246 = vmatpush.bf16.msra.mxu0 %v831_v8  ;;  %958 = vmatpush.bf16.msra.mxu3 %v831_v8  ;;  %48 = vst.msk [vmem:[#allocation4 + $0x28] sm:$0xff] %vm36_vm1, %v1059_v56 }
  0x25   :  { %270 = vmatpush.bf16.msra.mxu1 %v835_v9  ;;  %49 = vst.msk [vmem:[#allocation5] sm:$0xff] %vm36_vm1, %v1059_v56 }
  0x26   :  { %294 = vmatpush.bf16.msra.mxu2 %v839_v10  ;;  %50 = vst.msk [vmem:[#allocation5 + $0x8] sm:$0xff] %vm36_vm1, %v1059_v56 }
  0x27   :  { %247 = vmatmul.bf16.vlgmr.msra.gmra.mxu0 %v924_v11  ;;  %252 = vmatmul.bf16.vlgmr.msra.gmra.mxu3 %v925_v12  ;;  %51 = vst.msk [vmem:[#allocation5 + $0x10] sm:$0xff] %vm36_vm1, %v1059_v56 }
  0x28   :  { %271 = vmatmul.bf16.vlgmr.msra.gmra.mxu1 %v924_v11  ;;  %52 = vst.msk [vmem:[#allocation5 + $0x18] sm:$0xff] %vm36_vm1, %v1059_v56 }
  0x29   :  { %295 = vmatmul.bf16.vlgmr.msra.gmra.mxu2 %v924_v11  ;;  %53 = vst.msk [vmem:[#allocation5 + $0x20] sm:$0xff] %vm36_vm1, %v1059_v56  ;;  %v1238_v11 = vld [vmem:[#allocation3 + $0x20] sm:$0xff] }
  0x2a   :  { %54 = vst.msk [vmem:[#allocation5 + $0x28] sm:$0xff] %vm36_vm1, %v1059_v56 }
  0x37   :  { %257 = vmatmul.bf16.gmra.mxu3 %v926_v13 }
  0x38   :  { %276 = vmatmul.bf16.gmra.mxu1 %v925_v12 }
  0x39   :  { %300 = vmatmul.bf16.gmra.mxu2 %v925_v12 }
  0x48   :  { %281 = vmatmul.bf16.gmra.mxu1 %v926_v13 }
  0x49   :  { %305 = vmatmul.bf16.gmra.mxu2 %v926_v13  ;;  %v1243_v13 = vld [vmem:[%s1407_s2 + $0x10] sm:$0xff] }
  0x85   :  { %v1194_v57 = vpop.permute.xlu0 %454 }
  0x86   :  { %vm471_vm2 = vcmp.eq.s32.totalorder %v1104_v15, %v1194_v57  ;;  %vm473_vm4 = vcmp.eq.s32.totalorder %v1109_v17, %v1194_v57 }
  0x87   :  { %v1208_v63 = vpop.permute.xlu1 %457 }
  0x88   :  { %vm474_vm9 = vcmp.eq.s32.totalorder %v1104_v15, %v1208_v63  ;;  %vm476_vm10 = vcmp.eq.s32.totalorder %v1109_v17, %v1208_v63 }
  0xa4   :  { %v1111_v18 = vpop.f32.mrf.mxu0 }
  0xa5   :  { %v1106_v16 = vpop.f32.mrf.mxu1 }
  0xa6   :  { %v556_v19 = vmax.f32 %v1111_v18, %v1106_v16 }
  0xaa   :  { %v1127_v27 = vpop.f32.mrf.mxu3 }
  0xac   :  { %v296_v20 = vpop.f32.mrf.mxu2  ;;  %v1123_v24 = vpop.f32.mrf.mxu0 }
  0xad   :  { %v1118_v21 = vsel %vm422_vm0, %v296_v20, -inf  ;;  %v1120_v22 = vpop.f32.mrf.mxu1  ;;  %v1254_v20 = vld [vmem:[#allocation3 + $0x28] sm:$0xff] }
  0xae   :  { %v557_v23 = vmax.f32 %v556_v19, %v1118_v21  ;;  %v560_v26 = vmax.f32 %v1123_v24, %v1120_v22 }
  0xb0   :  { %558 = vmax.xlane.f32.xlu0 %v557_v23 }
  0xb2   :  { %v1151_v37 = vpop.f32.mrf.mxu3 }
  0xb4   :  { %v298_v25 = vpop.f32.mrf.mxu2 }
  0xb5   :  { %v1131_v28 = vsel %vm422_vm0, %v298_v25, -inf  ;;  %v1133_v29 = vpop.f32.mrf.mxu1  ;;  %v1259_v25 = vld [vmem:[%s1407_s2 + $0x18] sm:$0xff] }
  0xb6   :  { %v561_v30 = vmax.f32 %v560_v26, %v1131_v28  ;;  %v564_v32 = vmax.f32 %v1127_v27, %v1133_v29 }
  0xb8   :  { %562 = vmax.xlane.f32.xlu0 %v561_v30  ;;  %v1267_v30 = vld [vmem:[%s1407_s2 + $0x28] sm:$0xff] }
  0xba   :  { %v1162_v43 = vpop.f32.mrf.mxu3 }
  0xbc   :  { %v301_v33 = vpop.f32.mrf.mxu2 }
  0xbd   :  { %v1144_v34 = vsel %vm422_vm0, %v301_v33, -inf  ;;  %v1147_v35 = vpop.f32.mrf.mxu1 }
  0xbe   :  { %v565_v36 = vmax.f32 %v564_v32, %v1144_v34  ;;  %v568_v39 = vmax.f32 %v1151_v37, %v1147_v35  ;;  %v1279_v32 = vld [vmem:[%s1407_s2 + $0x20] sm:$0xff] }
  0xc0   :  { %566 = vmax.xlane.f32.xlu1 %v565_v36 }
  0xc2   :  { %v1173_v50 = vpop.f32.mrf.mxu3 }
  0xc4   :  { %v303_v38 = vpop.f32.mrf.mxu2 }
  0xc5   :  { %v1157_v40 = vsel %vm422_vm0, %v303_v38, -inf  ;;  %v1160_v42 = vpop.f32.mrf.mxu1 }
  0xc6   :  { %v569_v41 = vmax.f32 %v568_v39, %v1157_v40  ;;  %v572_v44 = vmax.f32 %v1162_v43, %v1160_v42 }
  0xc8   :  { %570 = vmax.xlane.f32.xlu1 %v569_v41 }
  0xcc   :  { %v306_v45 = vpop.f32.mrf.mxu2 }
  0xcd   :  { %v1168_v46 = vsel %vm422_vm0, %v306_v45, -inf  ;;  %v1171_v49 = vpop.f32.mrf.mxu1 }
  0xce   :  { %v573_v47 = vmax.f32 %v572_v44, %v1168_v46  ;;  %v576_v51 = vmax.f32 %v1173_v50, %v1171_v49 }
  0xd0   :  { %574 = vmax.xlane.f32.xlu2 %v573_v47 }
  0xd4   :  { %v308_v52 = vpop.f32.mrf.mxu2 }
  0xd5   :  { %v1179_v53 = vsel %vm422_vm0, %v308_v52, -inf }
  0xd6   :  { %v577_v55 = vmax.f32 %v576_v51, %v1179_v53 }
  0xd8   :  { %578 = vmax.xlane.f32.xlu2 %v577_v55 }
 0x123   :  { %v559_v59 = vpop.xlane.xlu0 %558 }
 0x124   :  { %v1199_v60 = vmax.f32 %v1196_v58, %v559_v59 }
 0x126   :  { %v592_v61 = vsub.f32 %v1196_v58, %v1199_v60  ;;  %736 = vst.msk [vmem:[#allocation3] sm:$0xff] %vm36_vm1, %v1199_v60  ;;  %618 = vperm.xlu2 %967, %v1199_v60  }
 0x12b   :  { %v563_v0 = vpop.xlane.xlu0 %562 }
 0x12c   :  { %v1211_v1 = vmax.f32 %v1206_v62, %v563_v0 }
 0x12e   :  { %v593_v2 = vsub.f32 %v1206_v62, %v1211_v1  ;;  %737 = vst.msk [vmem:[#allocation3 + $0x8] sm:$0xff] %vm36_vm1, %v1211_v1  ;;  %623 = vperm.xlu2 %967, %v1211_v1  }
 0x133   :  { %v567_v4 = vpop.xlane.xlu1 %566 }
 0x134   :  { %v1221_v5 = vmax.f32 %v1218_v3, %v567_v4 }
 0x136   :  { %v594_v6 = vsub.f32 %v1218_v3, %v1221_v5  ;;  %738 = vst.msk [vmem:[#allocation3 + $0x10] sm:$0xff] %vm36_vm1, %v1221_v5  ;;  %628 = vperm.xlu1 %966, %v1221_v5  }
 0x13b   :  { %v571_v8 = vpop.xlane.xlu1 %570 }
 0x13c   :  { %v1231_v9 = vmax.f32 %v1228_v7, %v571_v8 }
 0x13e   :  { %v595_v10 = vsub.f32 %v1228_v7, %v1231_v9  ;;  %739 = vst.msk [vmem:[#allocation3 + $0x18] sm:$0xff] %vm36_vm1, %v1231_v9  ;;  %633 = vperm.xlu2 %967, %v1231_v9  }
 0x140   :  { %v604_v58 = vmul.f32 1.442695, %v595_v10 }
 0x143   :  { %v575_v12 = vpop.xlane.xlu2 %574 }
 0x144   :  { %v1246_v14 = vmax.f32 %v1238_v11, %v575_v12 }
 0x146   :  { %v596_v19 = vsub.f32 %v1238_v11, %v1246_v14  ;;  %740 = vst.msk [vmem:[#allocation3 + $0x20] sm:$0xff] %vm36_vm1, %v1246_v14  ;;  %638 = vperm.xlu1 %966, %v1246_v14   ;;  %460 = vperm.xlu2 %967, %v1243_v13   ;;  %v590_v14 = vld [vmem:[#allocation4 + $0x20] sm:$0xff] }
 0x148   :  { %v606_v3 = vmul.f32 1.442695, %v596_v19 }
 0x14b   :  { %v579_v23 = vpop.xlane.xlu2 %578 }
 0x14c   :  { %v1262_v26 = vmax.f32 %v1254_v20, %v579_v23 }
 0x14e   :  { %v597_v31 = vsub.f32 %v1254_v20, %v1262_v26  ;;  %741 = vst.msk [vmem:[#allocation3 + $0x28] sm:$0xff] %vm36_vm1, %v1262_v26  ;;  %643 = vperm.xlu0 %965, %v1262_v26   ;;  %463 = vperm.xlu1 %966, %v1259_v25   ;;  %v490_v26 = vld [vmem:[#allocation5 + $0x8] sm:$0xff] }
 0x14f   :  { %469 = vperm.xlu2 %967, %v1267_v30  }
 0x156   :  { %466 = vperm.xlu0 %965, %v1279_v32  }
 0x180   :  { %v619_v33 = vpop.permute.xlu2 %618 }
 0x181   :  { %v646_v36 = vsub.f32 %v1111_v18, %v619_v33  ;;  %v647_v38 = vsub.f32 %v1106_v16, %v619_v33  ;;  %v648_v39 = vsub.f32 %v1118_v21, %v619_v33 }
 0x183   :  { %v664_v41 = vmul.f32 1.442695, %v646_v36  ;;  %v666_v44 = vmul.f32 1.442695, %v647_v38  ;;  %v668_v45 = vmul.f32 1.442695, %v648_v39 }
 0x185   :  { %968 = vpow2.f32 %v664_v41 }
 0x186   :  { %970 = vpow2.f32 %v666_v44 }
 0x187   :  { %972 = vpow2.f32 %v668_v45 }
 0x188   :  { %v624_v47 = vpop.permute.xlu2 %623 }
 0x189   :  { %v649_v51 = vsub.f32 %v1123_v24, %v624_v47  ;;  %v650_v52 = vsub.f32 %v1120_v22, %v624_v47  ;;  %v651_v55 = vsub.f32 %v1131_v28, %v624_v47 }
 0x18b   :  { %v969_v56 = vpop.eup %968  ;;  %v670_v59 = vmul.f32 1.442695, %v649_v51  ;;  %v672_v0 = vmul.f32 1.442695, %v650_v52  ;;  %v674_v8 = vmul.f32 1.442695, %v651_v55 }
 0x18c   :  { %v971_v4 = vpop.eup %970 }
 0x18d   :  { %974 = vpow2.f32 %v670_v59  ;;  %v700_v12 = vadd.f32 %v971_v4, %v969_v56  ;;  %v973_v23 = vpop.eup %972 }
 0x18e   :  { %976 = vpow2.f32 %v672_v0  ;;  %v1292_v0 = vadd.s32 128, %v1104_v15 }
 0x18f   :  { %v701_v33 = vadd.f32 %v973_v23, %v700_v12  ;;  %978 = vpow2.f32 %v674_v8 }
 0x190   :  { %vm472_vm3 = vcmp.eq.s32.totalorder %v1292_v0, %v1194_v57  ;;  %vm475_vm8 = vcmp.eq.s32.totalorder %v1292_v0, %v1208_v63 }
 0x191   :  { %702 = vadd.xlane.f32.xlu1 %v701_v33 }
 0x193   :  { %v975_v36 = vpop.eup %974 }
 0x194   :  { %v977_v38 = vpop.eup %976 }
 0x195   :  { %v704_v39 = vadd.f32 %v977_v38, %v975_v36  ;;  %v979_v41 = vpop.eup %978  ;;  %v495_v38 = vsel %vm471_vm2, %v1111_v18, 0.0 }
 0x197   :  { %v705_v44 = vadd.f32 %v979_v41, %v704_v39  ;;  %v496_v39 = vsel %vm472_vm3, %v1106_v16, 0.0 }
 0x198   :  { %v634_v45 = vpop.permute.xlu2 %633 }
 0x199   :  { %706 = vadd.xlane.f32.xlu0 %v705_v44  ;;  %v655_v47 = vsub.f32 %v1151_v37, %v634_v45  ;;  %v656_v51 = vsub.f32 %v1147_v35, %v634_v45  ;;  %v657_v52 = vsub.f32 %v1157_v40, %v634_v45 }
 0x19b   :  { %v682_v55 = vmul.f32 1.442695, %v655_v47  ;;  %v684_v56 = vmul.f32 1.442695, %v656_v51  ;;  %v686_v59 = vmul.f32 1.442695, %v657_v52  ;;  %v513_v52 = vadd.f32 %v496_v39, %v495_v38 }
 0x19d   :  { %980 = vpow2.f32 %v682_v55 }
 0x19e   :  { %982 = vpow2.f32 %v684_v56  ;;  %v497_v56 = vsel %vm473_vm4, %v1118_v21, 0.0 }
 0x19f   :  { %984 = vpow2.f32 %v686_v59  ;;  %v514_v18 = vadd.f32 %v513_v52, %v497_v56 }
 0x1a3   :  { %v981_v4 = vpop.eup %980 }
 0x1a4   :  { %v983_v8 = vpop.eup %982 }
 0x1a5   :  { %v712_v12 = vadd.f32 %v983_v8, %v981_v4  ;;  %v985_v23 = vpop.eup %984 }
 0x1a7   :  { %v713_v33 = vadd.f32 %v985_v23, %v712_v12 }
 0x1a8   :  { %v629_v36 = vpop.permute.xlu1 %628 }
 0x1a9   :  { %v652_v41 = vsub.f32 %v1127_v27, %v629_v36  ;;  %v653_v44 = vsub.f32 %v1133_v29, %v629_v36  ;;  %v654_v45 = vsub.f32 %v1144_v34, %v629_v36  ;;  %714 = vadd.xlane.f32.xlu1 %v713_v33 }
 0x1ab   :  { %v676_v47 = vmul.f32 1.442695, %v652_v41  ;;  %v678_v51 = vmul.f32 1.442695, %v653_v44  ;;  %v680_v55 = vmul.f32 1.442695, %v654_v45 }
 0x1ad   :  { %986 = vpow2.f32 %v676_v47 }
 0x1ae   :  { %988 = vpow2.f32 %v678_v51 }
 0x1af   :  { %990 = vpow2.f32 %v680_v55 }
 0x1b1   :  { %515 = vadd.xlane.f32.xlu1 %v514_v18 }
 0x1b3   :  { %v987_v16 = vpop.eup %986 }
 0x1b4   :  { %v989_v59 = vpop.eup %988 }
 0x1b5   :  { %v708_v4 = vadd.f32 %v989_v59, %v987_v16  ;;  %v991_v8 = vpop.eup %990 }
 0x1b7   :  { %v709_v12 = vadd.f32 %v991_v8, %v708_v4 }
 0x1b8   :  { %v639_v23 = vpop.permute.xlu1 %638 }
 0x1b9   :  { %v658_v33 = vsub.f32 %v1162_v43, %v639_v23  ;;  %v659_v57 = vsub.f32 %v1160_v42, %v639_v23  ;;  %v660_v36 = vsub.f32 %v1168_v46, %v639_v23  ;;  %710 = vadd.xlane.f32.xlu2 %v709_v12 }
 0x1bb   :  { %v688_v38 = vmul.f32 1.442695, %v658_v33  ;;  %v690_v21 = vmul.f32 1.442695, %v659_v57  ;;  %v692_v39 = vmul.f32 1.442695, %v660_v36  ;;  %v461_v36 = vpop.permute.xlu2 %460 }
 0x1bc   :  { %vm477_vm11 = vcmp.eq.s32.totalorder %v1104_v15, %v461_v36  ;;  %vm478_vm12 = vcmp.eq.s32.totalorder %v1292_v0, %v461_v36  ;;  %vm479_vm0 = vcmp.eq.s32.totalorder %v1109_v17, %v461_v36 }
 0x1bd   :  { %992 = vpow2.f32 %v688_v38  ;;  %v498_v38 = vsel %vm474_vm9, %v1123_v24, 0.0  ;;  %vm796_vm9 = vcmp.eq.s32.totalorder %v1279_v32, 4294967196 }
 0x1be   :  { %994 = vpow2.f32 %v690_v21 }
 0x1bf   :  { %996 = vpow2.f32 %v692_v39 }
 0x1c0   :  { %v644_v41 = vpop.permute.xlu0 %643  ;;  %v464_v44 = vpop.permute.xlu1 %463 }
 0x1c1   :  { %v661_v45 = vsub.f32 %v1173_v50, %v644_v41  ;;  %v662_v47 = vsub.f32 %v1171_v49, %v644_v41  ;;  %v663_v51 = vsub.f32 %v1179_v53, %v644_v41  ;;  %vm480_vm5 = vcmp.eq.s32.totalorder %v1104_v15, %v464_v44 }
 0x1c2   :  { %vm481_vm6 = vcmp.eq.s32.totalorder %v1292_v0, %v464_v44  ;;  %v504_v52 = vsel %vm480_vm5, %v1151_v37, 0.0  ;;  %vm482_vm7 = vcmp.eq.s32.totalorder %v1109_v17, %v464_v44  ;;  %vm792_vm5 = vcmp.eq.s32.totalorder %v1086_v48, 4294967196  ;;  %v492_v48 = vld [vmem:[#allocation5 + $0x18] sm:$0xff] }
 0x1c3   :  { %v993_v55 = vpop.eup %992  ;;  %v694_v56 = vmul.f32 1.442695, %v661_v45  ;;  %v696_v18 = vmul.f32 1.442695, %v662_v47  ;;  %v698_v59 = vmul.f32 1.442695, %v663_v51 }
 0x1c4   :  { %v995_v16 = vpop.eup %994  ;;  %v505_v4 = vsel %vm481_vm6, %v1147_v35, 0.0  ;;  %v506_v37 = vsel %vm482_vm7, %v1157_v40, 0.0  ;;  %v499_v35 = vsel %vm475_vm8, %v1120_v22, 0.0  ;;  %v500_v40 = vsel %vm476_vm10, %v1131_v28, 0.0  ;;  %v470_v28 = vpop.permute.xlu2 %469 }
 0x1c5   :  { %998 = vpow2.f32 %v694_v56  ;;  %v525_v8 = vadd.f32 %v505_v4, %v504_v52  ;;  %v716_v12 = vadd.f32 %v995_v16, %v993_v55  ;;  %v997_v23 = vpop.eup %996  ;;  %v517_v44 = vadd.f32 %v499_v35, %v498_v38  ;;  %v489_v35 = vld [vmem:[#allocation5] sm:$0xff] }
 0x1c6   :  { %1000 = vpow2.f32 %v696_v18  ;;  %v501_v52 = vsel %vm477_vm11, %v1127_v27, 0.0  ;;  %v502_v55 = vsel %vm478_vm12, %v1133_v29, 0.0  ;;  %vm486_vm2 = vcmp.eq.s32.totalorder %v1104_v15, %v470_v28 }
 0x1c7   :  { %v526_v33 = vadd.f32 %v525_v8, %v506_v37  ;;  %v717_v57 = vadd.f32 %v997_v23, %v716_v12  ;;  %1002 = vpow2.f32 %v698_v59  ;;  %v518_v45 = vadd.f32 %v517_v44, %v500_v40  ;;  %v587_v23 = vld [vmem:[#allocation4 + $0x8] sm:$0xff]  ;;  %v744_v44 = vld [vmem:[#allocation3] sm:$0xff] }
 0x1c8   :  { %v467_v21 = vpop.permute.xlu0 %466  ;;  %v521_v18 = vadd.f32 %v502_v55, %v501_v52  ;;  %vm487_vm3 = vcmp.eq.s32.totalorder %v1292_v0, %v470_v28  ;;  %v510_v29 = vsel %vm486_vm2, %v1173_v50, 0.0  ;;  %vm488_vm4 = vcmp.eq.s32.totalorder %v1109_v17, %v470_v28 }
 0x1c9   :  { %527 = vadd.xlane.f32.xlu1 %v526_v33  ;;  %718 = vadd.xlane.f32.xlu2 %v717_v57  ;;  %vm483_vm13 = vcmp.eq.s32.totalorder %v1104_v15, %v467_v21  ;;  %vm484_vm14 = vcmp.eq.s32.totalorder %v1292_v0, %v467_v21  ;;  %vm485_vm15 = vcmp.eq.s32.totalorder %v1109_v17, %v467_v21  ;;  %v511_v59 = vsel %vm487_vm3, %v1171_v49, 0.0  ;;  %v586_v49 = vld [vmem:[#allocation4] sm:$0xff] }
 0x1ca   :  { %v507_v63 = vsel %vm483_vm13, %v1162_v43, 0.0  ;;  %v508_v51 = vsel %vm484_vm14, %v1160_v42, 0.0  ;;  %v509_v43 = vsel %vm485_vm15, %v1168_v46, 0.0  ;;  %v503_v42 = vsel %vm479_vm0, %v1144_v34, 0.0 }
 0x1cb   :  { %v999_v39 = vpop.eup %998  ;;  %v529_v56 = vadd.f32 %v508_v51, %v507_v63  ;;  %v522_v16 = vadd.f32 %v521_v18, %v503_v42  ;;  %v533_v4 = vadd.f32 %v511_v59, %v510_v29  ;;  %v512_v8 = vsel %vm488_vm4, %v1179_v53, 0.0 }
 0x1cc   :  { %v1001_v41 = vpop.eup %1000  ;;  %v598_v46 = vmul.f32 1.442695, %v592_v61  ;;  %v600_v34 = vmul.f32 1.442695, %v593_v2  ;;  %v589_v61 = vld [vmem:[#allocation4 + $0x18] sm:$0xff]  ;;  %vm795_vm6 = vcmp.eq.s32.totalorder %v1259_v25, 4294967196 }
 0x1cd   :  { %v720_v22 = vadd.f32 %v1001_v41, %v999_v39  ;;  %v1003_v24 = vpop.eup %1002  ;;  %v530_v27 = vadd.f32 %v529_v56, %v509_v43  ;;  %v534_v15 = vadd.f32 %v533_v4, %v512_v8  ;;  %v602_v38 = vmul.f32 1.442695, %v594_v6  ;;  %v588_v39 = vld [vmem:[#allocation4 + $0x10] sm:$0xff] }
 0x1ce   :  { %1004 = vpow2.f32 %v598_v46  ;;  %v608_v51 = vmul.f32 1.442695, %v597_v31  ;;  %vm793_vm7 = vcmp.eq.s32.totalorder %v1092_v54, 4294967196  ;;  %vm794_vm8 = vcmp.eq.s32.totalorder %v1243_v13, 4294967196  ;;  %v749_v13 = vld [vmem:[#allocation3 + $0x28] sm:$0xff] }
 0x1cf   :  { %v721_v47 = vadd.f32 %v1003_v24, %v720_v22  ;;  %1006 = vpow2.f32 %v600_v34  ;;  %vm797_vm10 = vcmp.eq.s32.totalorder %v1267_v30, 4294967196 }
 0x1d0   :  { %1008 = vpow2.f32 %v604_v58 }
 0x1d1   :  { %519 = vadd.xlane.f32.xlu2 %v518_v45  ;;  %722 = vadd.xlane.f32.xlu0 %v721_v47 }
 0x1d4   :  { %v1005_v50 = vpop.eup %1004 }
 0x1d5   :  { %v610_v0 = vmul.f32 %v1005_v50, %v586_v49  ;;  %v1007_v53 = vpop.eup %1006 }
 0x1d6   :  { %v611_v37 = vmul.f32 %v1007_v53, %v587_v23  ;;  %v1009_v60 = vpop.eup %1008  ;;  %v491_v53 = vld [vmem:[#allocation5 + $0x10] sm:$0xff]  ;;  %v493_v23 = vld [vmem:[#allocation5 + $0x20] sm:$0xff] }
 0x1d7   :  { %v613_v62 = vmul.f32 %v1009_v60, %v589_v61 }
 0x1d9   :  { %531 = vadd.xlane.f32.xlu2 %v530_v27  ;;  %523 = vadd.xlane.f32.xlu0 %v522_v16  ;;  %v591_v27 = vld [vmem:[#allocation4 + $0x28] sm:$0xff] }
 0x1da   :  { %v747_v16 = vld [vmem:[#allocation3 + $0x18] sm:$0xff] }
 0x1e1   :  { %535 = vadd.xlane.f32.xlu0 %v534_v15 }
 0x204   :  { %v703_v12 = vpop.xlane.xlu1 %702 }
 0x205   :  { %v724_v17 = vadd.f32 %v703_v12, %v610_v0 }
 0x207   :  { %730 = vst.msk [vmem:[#allocation4] sm:$0xff] %vm36_vm1, %v724_v17 }
 0x20c   :  { %v707_v33 = vpop.xlane.xlu0 %706 }
 0x20d   :  { %v725_v57 = vadd.f32 %v707_v33, %v611_v37  ;;  %v745_v33 = vld [vmem:[#allocation3 + $0x8] sm:$0xff] }
 0x20e   :  { %v750_v2 = vld [vmem:[#allocation4] sm:$0xff] }
 0x20f   :  { %731 = vst.msk [vmem:[#allocation4 + $0x8] sm:$0xff] %vm36_vm1, %v725_v57  ;;  %1010 = vlog2.f32 %v750_v2 }
 0x210   :  { %1012 = vpow2.f32 %v602_v38 }
 0x211   :  { %1014 = vpow2.f32 %v606_v3 }
 0x215   :  { %v1011_v10 = vpop.eup %1010 }
 0x216   :  { %v1013_v21 = vpop.eup %1012  ;;  %v757_v41 = vmul.f32 0.6931472, %v1011_v10  ;;  %v751_v43 = vld [vmem:[#allocation4 + $0x8] sm:$0xff]  ;;  %v746_v10 = vld [vmem:[#allocation3 + $0x10] sm:$0xff] }
 0x217   :  { %v612_v40 = vmul.f32 %v1013_v21, %v588_v39  ;;  %v1015_v11 = vpop.eup %1014  ;;  %v748_v39 = vld [vmem:[#allocation3 + $0x20] sm:$0xff] }
 0x218   :  { %v768_v24 = vadd.f32 %v757_v41, %v744_v44  ;;  %v614_v19 = vmul.f32 %v1015_v11, %v590_v14 }
 0x21c   :  { %v715_v1 = vpop.xlane.xlu1 %714 }
 0x21d   :  { %v727_v36 = vadd.f32 %v715_v1, %v613_v62 }
 0x21f   :  { %733 = vst.msk [vmem:[#allocation4 + $0x18] sm:$0xff] %vm36_vm1, %v727_v36 }
 0x224   :  { %v516_v7 = vpop.xlane.xlu1 %515 }
 0x225   :  { %v537_v9 = vadd.f32 %v516_v7, %v489_v35 }
 0x226   :  { %v753_v63 = vld [vmem:[#allocation4 + $0x18] sm:$0xff] }
 0x227   :  { %544 = vst.msk [vmem:[#allocation5] sm:$0xff] %vm36_vm1, %v537_v9  ;;  %1016 = vlog2.f32 %v753_v63  ;;  %v494_v9 = vld [vmem:[#allocation5 + $0x28] sm:$0xff] }
 0x228   :  { %1018 = vpow2.f32 %v608_v51 }
 0x229   :  { %1020 = vlog2.f32 %v751_v43 }
 0x22c   :  { %v711_v22 = vpop.xlane.xlu2 %710 }
 0x22d   :  { %v726_v45 = vadd.f32 %v711_v22, %v612_v40  ;;  %v1017_v18 = vpop.eup %1016 }
 0x22e   :  { %v774_v5 = vld [vmem:[#allocation5] sm:$0xff]  ;;  %v1019_v42 = vpop.eup %1018  ;;  %v763_v20 = vmul.f32 0.6931472, %v1017_v18 }
 0x22f   :  { %v780_v6 = vsub.f32 %v768_v24, %v774_v5  ;;  %732 = vst.msk [vmem:[#allocation4 + $0x10] sm:$0xff] %vm36_vm1, %v726_v45  ;;  %v615_v31 = vmul.f32 %v1019_v42, %v591_v27  ;;  %v1021_v50 = vpop.eup %1020 }
 0x230   :  { %v771_v8 = vadd.f32 %v763_v20, %v747_v16  ;;  %v759_v17 = vmul.f32 0.6931472, %v1021_v50 }
 0x231   :  { %v798_v47 = vsel %vm792_vm5, 0.0, %v780_v6 }
 0x232   :  { %805 = vst.msk [vmem:[%s1408_s3] sm:$0xff] %vm36_vm1, %v798_v47  ;;  %v769_v62 = vadd.f32 %v759_v17, %v745_v33 }
 0x236   :  { %v752_v4 = vld [vmem:[#allocation4 + $0x10] sm:$0xff] }
 0x237   :  { %1022 = vlog2.f32 %v752_v4 }
 0x23c   :  { %v528_v52 = vpop.xlane.xlu1 %527  ;;  %v719_v55 = vpop.xlane.xlu2 %718 }
 0x23d   :  { %v540_v28 = vadd.f32 %v528_v52, %v492_v48  ;;  %v728_v56 = vadd.f32 %v719_v55, %v614_v19  ;;  %v1023_v60 = vpop.eup %1022 }
 0x23e   :  { %v761_v38 = vmul.f32 0.6931472, %v1023_v60 }
 0x23f   :  { %547 = vst.msk [vmem:[#allocation5 + $0x18] sm:$0xff] %vm36_vm1, %v540_v28 }
 0x240   :  { %734 = vst.msk [vmem:[#allocation4 + $0x20] sm:$0xff] %vm36_vm1, %v728_v56  ;;  %v770_v54 = vadd.f32 %v761_v38, %v746_v10 }
 0x244   :  { %v723_v29 = vpop.xlane.xlu0 %722  ;;  %v520_v59 = vpop.xlane.xlu2 %519 }
 0x245   :  { %v729_v15 = vadd.f32 %v723_v29, %v615_v31  ;;  %v538_v46 = vadd.f32 %v520_v59, %v490_v26 }
 0x246   :  { %v777_v34 = vld [vmem:[#allocation5 + $0x18] sm:$0xff] }
 0x247   :  { %v783_v49 = vsub.f32 %v771_v8, %v777_v34  ;;  %v754_v0 = vld [vmem:[#allocation4 + $0x20] sm:$0xff]  ;;  %735 = vst.msk [vmem:[#allocation4 + $0x28] sm:$0xff] %vm36_vm1, %v729_v15 }
 0x248   :  { %545 = vst.msk [vmem:[#allocation5 + $0x8] sm:$0xff] %vm36_vm1, %v538_v46  ;;  %1024 = vlog2.f32 %v754_v0 }
 0x249   :  { %v801_v12 = vsel %vm795_vm6, 0.0, %v783_v49 }
 0x24a   :  { %808 = vst.msk [vmem:[%s1408_s3 + $0x18] sm:$0xff] %vm36_vm1, %v801_v12 }
 0x24c   :  { %v524_v25 = vpop.xlane.xlu0 %523  ;;  %v532_v37 = vpop.xlane.xlu2 %531 }
 0x24d   :  { %v539_v57 = vadd.f32 %v524_v25, %v491_v53  ;;  %v541_v58 = vadd.f32 %v532_v37, %v493_v23 }
 0x24e   :  { %v755_v61 = vld [vmem:[#allocation4 + $0x28] sm:$0xff]  ;;  %v1025_v1 = vpop.eup %1024 }
 0x24f   :  { %v775_v2 = vld [vmem:[#allocation5 + $0x8] sm:$0xff]  ;;  %546 = vst.msk [vmem:[#allocation5 + $0x10] sm:$0xff] %vm36_vm1, %v539_v57  ;;  %1026 = vlog2.f32 %v755_v61  ;;  %v765_v35 = vmul.f32 0.6931472, %v1025_v1 }
 0x250   :  { %v781_v36 = vsub.f32 %v769_v62, %v775_v2  ;;  %548 = vst.msk [vmem:[#allocation5 + $0x20] sm:$0xff] %vm36_vm1, %v541_v58 }
 0x251   :  { %v772_v22 = vadd.f32 %v765_v35, %v748_v39 }
 0x252   :  { %v799_v7 = vsel %vm793_vm7, 0.0, %v781_v36 }
 0x253   :  { %806 = vst.msk [vmem:[%s1408_s3 + $0x8] sm:$0xff] %vm36_vm1, %v799_v7 }
 0x254   :  { %v536_v21 = vpop.xlane.xlu0 %535 }
 0x255   :  { %v542_v41 = vadd.f32 %v536_v21, %v494_v9  ;;  %v1027_v40 = vpop.eup %1026 }
 0x256   :  { %v776_v44 = vld [vmem:[#allocation5 + $0x10] sm:$0xff]  ;;  %v767_v5 = vmul.f32 0.6931472, %v1027_v40 }
 0x257   :  { %v782_v24 = vsub.f32 %v770_v54, %v776_v44  ;;  %v778_v45 = vld [vmem:[#allocation5 + $0x20] sm:$0xff]  ;;  %549 = vst.msk [vmem:[#allocation5 + $0x28] sm:$0xff] %vm36_vm1, %v542_v41 }
 0x258   :  { %v784_v3 = vsub.f32 %v772_v22, %v778_v45  ;;  %v773_v63 = vadd.f32 %v767_v5, %v749_v13 }
 0x259   :  { %v800_v6 = vsel %vm794_vm8, 0.0, %v782_v24 }
 0x25a   :  { %807 = vst.msk [vmem:[%s1408_s3 + $0x10] sm:$0xff] %vm36_vm1, %v800_v6  ;;  %v802_v47 = vsel %vm796_vm9, 0.0, %v784_v3 }
 0x25b   :  { %809 = vst.msk [vmem:[%s1408_s3 + $0x20] sm:$0xff] %vm36_vm1, %v802_v47 }
 0x25e   :  { %v779_v32 = vld [vmem:[#allocation5 + $0x28] sm:$0xff] }
 0x25f   :  { %v785_v51 = vsub.f32 %v773_v63, %v779_v32 }
 0x261   :  { %v803_v11 = vsel %vm797_vm10, 0.0, %v785_v51 }
 0x262   :  { %810 = vst.msk [vmem:[%s1408_s3 + $0x28] sm:$0xff] %vm36_vm1, %v803_v11 }
 0x263   :  { %815 = vsyncpa [#allocation7], 1 }

</bundles_post_ra>
